<compile_context>
chip_gen: v7x
topology: tpu7x:2x2x1
jax: 0.10.0
libtpu: 0.0.40
codegen_flags: <defaults>
</compile_context>

<pallas_src>
import jax
import jax.numpy as jnp
from jax import lax
from jax.experimental import pallas as pl
from jax.experimental.pallas import tpu as pltpu


def lstm_cell_kernel(
    ids_ref,        # (B, 1)      int32  token ids
    emb_ref,        # (V, E)      f32    embedding table
    aux_ref,        # (4, 4H)     f32    row0=hidden[:H], row1=cell[:H], row2=b_gates, row3=bout[:V]
    w_gates_ref,    # (E+H, 4H)   f32    rows [0:E)   = [Wf|Wi|Wo|Wc]
                    #                    rows [E:E+H) = [Uf|Ui|Uo|Uc]
    wout_ref,       # (H, V)      f32
    out_ref,        # out (B, V+2H) f32  [logp | new_h | new_c]
):
    B = ids_ref.shape[0]
    V, E = emb_ref.shape
    H = wout_ref.shape[0]

    # ---- embedding gather fused into the kernel: one-hot @ table on the MXU (exact) ----
    ids = ids_ref[...]                                            # (B, 1) int32
    col = lax.broadcasted_iota(jnp.int32, (B, V), 1)              # (B, V)
    onehot = (col == ids).astype(jnp.float32)                     # (B, V)
    x = jnp.dot(onehot, emb_ref[...],
                preferred_element_type=jnp.float32)               # (B, E)

    # ---- unpack the small aux slab (static slices: free views) ----
    h = aux_ref[0:1, 0:H]                                         # (1, H)
    c = aux_ref[1:2, 0:H]                                         # (1, H)
    b_gates = aux_ref[2:3, :]                                     # (1, 4H)
    bout = aux_ref[3:4, 0:V]                                      # (1, V)

    # ---- gates: two accumulating dots, no concat / broadcast through the MXU ----
    gates = (
        jnp.dot(x, w_gates_ref[0:E, :], preferred_element_type=jnp.float32)       # (B, 4H)
        + jnp.dot(h, w_gates_ref[E:E + H, :], preferred_element_type=jnp.float32)  # (1, 4H) bcast
        + b_gates
    )                                                             # (B, 4H)

    # ---- full-width transcendentals, slice afterwards ----
    sig = jax.nn.sigmoid(gates)                                   # (B, 4H)
    th = jnp.tanh(gates)                                          # (B, 4H)
    f = sig[:, 0 * H:1 * H]
    i = sig[:, 1 * H:2 * H]
    o = sig[:, 2 * H:3 * H]
    c_tilde = th[:, 3 * H:4 * H]

    new_c = c * f + i * c_tilde                                   # (B, H)
    new_h = jnp.tanh(new_c) * o                                   # (B, H)

    # ---- output projection + LogSoftmax over dim=0 (batch), as in the module ----
    logits = (
        jnp.dot(new_h, wout_ref[...], preferred_element_type=jnp.float32) + bout
    )                                                             # (B, V)
    m = jnp.max(logits, axis=0, keepdims=True)
    lse = jnp.log(jnp.sum(jnp.exp(logits - m), axis=0, keepdims=True)) + m

    # ---- single lane-dense packed output: [logp | new_h | new_c] ----
    out_ref[:, 0:V] = logits - lse
    out_ref[:, V:V + H] = new_h
    out_ref[:, V + H:V + 2 * H] = new_c


def pack_params(params):
    """One-time packing of per-gate weights into fused kernel operands."""
    E = params["wf"].shape[0]
    H = params["wf"].shape[1]
    V = params["wout"].shape[1]
    G = 4 * H

    w_x = jnp.concatenate(
        [params["wf"], params["wi"], params["wo"], params["wc"]], axis=1)   # (E, 4H)
    w_h = jnp.concatenate(
        [params["uf"], params["ui"], params["uo"], params["uc"]], axis=1)   # (H, 4H)
    b_gates = jnp.concatenate(
        [params["bf"], params["bi"], params["bo"], params["bc"]], axis=1)   # (1, 4H)

    # Static rows (2,3) of the (4, 4H) aux slab: gate biases and output bias.
    aux_bias = jnp.zeros((4, G), jnp.float32)
    aux_bias = aux_bias.at[2, :].set(b_gates[0])
    aux_bias = aux_bias.at[3, :V].set(params["bout"][0])

    return {
        "embedding": params["embedding"],                                   # (V, E)
        "w_gates": jnp.concatenate([w_x, w_h], axis=0),                     # (E+H, 4H)
        "aux_bias": aux_bias,                                               # (4, 4H)
        "wout": params["wout"],                                             # (H, V)
    }


def lstm_forward(token_ids, hidden, cell_state, packed):
    """token_ids: (B,) int32; hidden, cell_state: (H,) f32; packed: pack_params() dict."""
    B = token_ids.shape[0]
    H = hidden.shape[0]
    V, E = packed["embedding"].shape
    G = packed["w_gates"].shape[1]                       # 4H

    ids2d = token_ids.reshape(B, 1).astype(jnp.int32)

    # Fill dynamic rows (0,1) of the precomputed aux slab with hidden / cell.
    aux = packed["aux_bias"].at[0, :H].set(hidden).at[1, :H].set(cell_state)  # (4, 4H)

    vmem = pl.BlockSpec(memory_space=pltpu.MemorySpace.VMEM)
    out_width = V + 2 * H                                # lane-dense: 64 + 64 = 128

    flops = 2 * B * V * E + 2 * B * (E + H) * G + 2 * B * H * V
    bytes_accessed = 4 * (B * 1 + V * E + 4 * G + (E + H) * G + H * V + B * out_width)
    cost = pl.CostEstimate(
        flops=flops,
        transcendentals=2 * B * G + B * H + B * V,
        bytes_accessed=bytes_accessed,
    )

    packed_out = pl.pallas_call(
        lstm_cell_kernel,
        out_shape=jax.ShapeDtypeStruct((B, out_width), jnp.float32),
        in_specs=[vmem] * 5,
        out_specs=vmem,
        cost_estimate=cost,
    )(
        ids2d,
        packed["embedding"],
        aux,
        packed["w_gates"],
        packed["wout"],
    )

    logp = packed_out[:, 0:V]
    new_h = packed_out[:, V:V + H]
    new_c = packed_out[:, V + H:V + 2 * H]
    return logp, new_h, new_c


lstm_forward = jax.jit(lstm_forward)


def init_params(key, voc_size, embedding_dim, hidden_size):
    """Deterministic parameter init mirroring the PyTorch module's layer shapes.
    Linear weights are stored transposed: (in_features, out_features)."""
    ks = jax.random.split(key, 16)

    def lin_w(k, fan_in, fan_out):
        bound = 1.0 / jnp.sqrt(fan_in)
        return jax.random.uniform(k, (fan_in, fan_out), jnp.float32, -bound, bound)

    def lin_b(k, fan_in, fan_out):
        bound = 1.0 / jnp.sqrt(fan_in)
        return jax.random.uniform(k, (1, fan_out), jnp.float32, -bound, bound)

    params = {
        "embedding": jax.random.normal(ks[0], (voc_size, embedding_dim), jnp.float32),
        # w*: Linear(embedding_dim -> hidden, bias=False)
        "wf": lin_w(ks[1], embedding_dim, hidden_size),
        "wi": lin_w(ks[2], embedding_dim, hidden_size),
        "wo": lin_w(ks[3], embedding_dim, hidden_size),
        "wc": lin_w(ks[4], embedding_dim, hidden_size),
        # u*: Linear(hidden -> hidden, bias=True)
        "uf": lin_w(ks[5], hidden_size, hidden_size),
        "ui": lin_w(ks[6], hidden_size, hidden_size),
        "uo": lin_w(ks[7], hidden_size, hidden_size),
        "uc": lin_w(ks[8], hidden_size, hidden_size),
        "bf": lin_b(ks[9], hidden_size, hidden_size),
        "bi": lin_b(ks[10], hidden_size, hidden_size),
        "bo": lin_b(ks[11], hidden_size, hidden_size),
        "bc": lin_b(ks[12], hidden_size, hidden_size),
        # out: Linear(hidden -> voc_size, bias=True)
        "wout": lin_w(ks[13], hidden_size, voc_size),
        "bout": lin_b(ks[14], hidden_size, voc_size),
    }
    return params


if __name__ == "__main__":
    VOC, EMB, HID, BATCH = 64, 16, 32, 8

    key = jax.random.PRNGKey(0)
    k_params, k_tok, k_h, k_c = jax.random.split(key, 4)

    params = init_params(k_params, VOC, EMB, HID)
    packed = pack_params(params)
    token_ids = jax.random.randint(k_tok, (BATCH,), 0, VOC, dtype=jnp.int32)
    hidden = jax.random.normal(k_h, (HID,), jnp.float32)
    cell_state = jax.random.normal(k_c, (HID,), jnp.float32)

    logp, new_h, new_c = lstm_forward(token_ids, hidden, cell_state, packed)
    jax.block_until_ready((logp, new_h, new_c))

    # Pure-JAX reference check (same math, outside Pallas, unfused params).
    embed = params["embedding"][token_ids]
    hf = hidden.reshape(1, HID)
    cf = cell_state.reshape(1, HID)
    f = jax.nn.sigmoid(embed @ params["wf"] + hf @ params["uf"] + params["bf"])
    i = jax.nn.sigmoid(embed @ params["wi"] + hf @ params["ui"] + params["bi"])
    o = jax.nn.sigmoid(embed @ params["wo"] + hf @ params["uo"] + params["bo"])
    ct = jnp.tanh(embed @ params["wc"] + hf @ params["uc"] + params["bc"])
    ref_c = cf * f + i * ct
    ref_h = jnp.tanh(ref_c) * o
    ref_logits = ref_h @ params["wout"] + params["bout"]
    ref_logp = jax.nn.log_softmax(ref_logits, axis=0)   # matches module's LogSoftmax(dim=0)

    assert jnp.allclose(logp, ref_logp, atol=2e-5), "log-softmax output mismatch"
    assert jnp.allclose(new_h, ref_h, atol=2e-5), "hidden mismatch"
    assert jnp.allclose(new_c, ref_c, atol=2e-5), "cell mismatch"

    print("KERNEL_OK")
</pallas_src>

<mosaic_0001>
module attributes {stable_mosaic.version = 11 : i64} {
  func.func @lstm_cell_kernel(%arg0: memref<8x1xi32, #tpu.memory_space<vmem>>, %arg1: memref<64x16xf32, #tpu.memory_space<vmem>>, %arg2: memref<4x128xf32, #tpu.memory_space<vmem>>, %arg3: memref<48x128xf32, #tpu.memory_space<vmem>>, %arg4: memref<32x64xf32, #tpu.memory_space<vmem>>, %arg5: memref<8x128xf32, #tpu.memory_space<vmem>>) attributes {dimension_semantics = [], scalar_prefetch = 0 : i64, scratch_operands = 0 : i64, tpu.core_type = #tpu.core_type<tc>} {
    %c0 = arith.constant 0 : index
    %c0_0 = arith.constant 0 : index
    %0 = vector.load %arg0[%c0, %c0_0] : memref<8x1xi32, #tpu.memory_space<vmem>>, vector<8x1xi32>
    %1 = tpu.iota {dimensions = array<i32: 1>} : vector<8x64xi32>
    %2 = vector.broadcast %0 : vector<8x1xi32> to vector<8x64xi32>
    %3 = arith.cmpi eq, %1, %2 : vector<8x64xi32>
    %4 = arith.extui %3 : vector<8x64xi1> to vector<8x64xi32>
    %5 = arith.sitofp %4 : vector<8x64xi32> to vector<8x64xf32>
    %c0_1 = arith.constant 0 : index
    %c0_2 = arith.constant 0 : index
    %6 = vector.load %arg1[%c0_1, %c0_2] : memref<64x16xf32, #tpu.memory_space<vmem>>, vector<64x16xf32>
    %cst = arith.constant dense<0.000000e+00> : vector<8x16xf32>
    %7 = tpu.matmul %5, %6, %cst {dimension_numbers = #tpu.dot_dimension_numbers<[1], [0], [0], [1], [0, 0, 1, 1], [], []>} : vector<8x64xf32>, vector<64x16xf32>, vector<8x16xf32> -> vector<8x16xf32>
    %c0_3 = arith.constant 0 : index
    %c0_4 = arith.constant 0 : index
    %8 = vector.load %arg2[%c0_3, %c0_4] : memref<4x128xf32, #tpu.memory_space<vmem>>, vector<1x32xf32>
    %c1 = arith.constant 1 : index
    %c0_5 = arith.constant 0 : index
    %9 = vector.load %arg2[%c1, %c0_5] : memref<4x128xf32, #tpu.memory_space<vmem>>, vector<1x32xf32>
    %c2 = arith.constant 2 : index
    %c0_6 = arith.constant 0 : index
    %10 = vector.load %arg2[%c2, %c0_6] : memref<4x128xf32, #tpu.memory_space<vmem>>, vector<1x128xf32>
    %c3 = arith.constant 3 : index
    %c0_7 = arith.constant 0 : index
    %11 = vector.load %arg2[%c3, %c0_7] : memref<4x128xf32, #tpu.memory_space<vmem>>, vector<1x64xf32>
    %c0_8 = arith.constant 0 : index
    %c0_9 = arith.constant 0 : index
    %12 = vector.load %arg3[%c0_8, %c0_9] : memref<48x128xf32, #tpu.memory_space<vmem>>, vector<16x128xf32>
    %cst_10 = arith.constant dense<0.000000e+00> : vector<8x128xf32>
    %13 = tpu.matmul %7, %12, %cst_10 {dimension_numbers = #tpu.dot_dimension_numbers<[1], [0], [0], [1], [0, 0, 1, 1], [], []>} : vector<8x16xf32>, vector<16x128xf32>, vector<8x128xf32> -> vector<8x128xf32>
    %c16 = arith.constant 16 : index
    %c0_11 = arith.constant 0 : index
    %14 = vector.load %arg3[%c16, %c0_11] : memref<48x128xf32, #tpu.memory_space<vmem>>, vector<32x128xf32>
    %cst_12 = arith.constant dense<0.000000e+00> : vector<1x128xf32>
    %15 = tpu.matmul %8, %14, %cst_12 {dimension_numbers = #tpu.dot_dimension_numbers<[1], [0], [0], [1], [0, 0, 1, 1], [], []>} : vector<1x32xf32>, vector<32x128xf32>, vector<1x128xf32> -> vector<1x128xf32>
    %16 = vector.broadcast %15 : vector<1x128xf32> to vector<8x128xf32>
    %17 = arith.addf %13, %16 : vector<8x128xf32>
    %18 = vector.broadcast %10 : vector<1x128xf32> to vector<8x128xf32>
    %19 = arith.addf %17, %18 : vector<8x128xf32>
    %20 = arith.negf %19 : vector<8x128xf32>
    %21 = math.exp %20 : vector<8x128xf32>
    %cst_13 = arith.constant 1.000000e+00 : f32
    %22 = vector.broadcast %cst_13 : f32 to vector<8x128xf32>
    %23 = arith.addf %22, %21 : vector<8x128xf32>
    %24 = arith.divf %22, %23 : vector<8x128xf32>
    %25 = math.tanh %19 : vector<8x128xf32>
    %26 = vector.extract_strided_slice %24 {offsets = [0, 0], sizes = [8, 32], strides = [1, 1]} : vector<8x128xf32> to vector<8x32xf32>
    %27 = vector.extract_strided_slice %24 {offsets = [0, 32], sizes = [8, 32], strides = [1, 1]} : vector<8x128xf32> to vector<8x32xf32>
    %28 = vector.extract_strided_slice %24 {offsets = [0, 64], sizes = [8, 32], strides = [1, 1]} : vector<8x128xf32> to vector<8x32xf32>
    %29 = vector.extract_strided_slice %25 {offsets = [0, 96], sizes = [8, 32], strides = [1, 1]} : vector<8x128xf32> to vector<8x32xf32>
    %30 = vector.broadcast %9 : vector<1x32xf32> to vector<8x32xf32>
    %31 = arith.mulf %30, %26 : vector<8x32xf32>
    %32 = arith.mulf %27, %29 : vector<8x32xf32>
    %33 = arith.addf %31, %32 : vector<8x32xf32>
    %34 = math.tanh %33 : vector<8x32xf32>
    %35 = arith.mulf %34, %28 : vector<8x32xf32>
    %c0_14 = arith.constant 0 : index
    %c0_15 = arith.constant 0 : index
    %36 = vector.load %arg4[%c0_14, %c0_15] : memref<32x64xf32, #tpu.memory_space<vmem>>, vector<32x64xf32>
    %cst_16 = arith.constant dense<0.000000e+00> : vector<8x64xf32>
    %37 = tpu.matmul %35, %36, %cst_16 {dimension_numbers = #tpu.dot_dimension_numbers<[1], [0], [0], [1], [0, 0, 1, 1], [], []>} : vector<8x32xf32>, vector<32x64xf32>, vector<8x64xf32> -> vector<8x64xf32>
    %38 = vector.broadcast %11 : vector<1x64xf32> to vector<8x64xf32>
    %39 = arith.addf %37, %38 : vector<8x64xf32>
    %cst_17 = arith.constant dense<0xFF800000> : vector<64xf32>
    %40 = vector.multi_reduction <maximumf>, %39, %cst_17 [0] : vector<8x64xf32> to vector<64xf32>
    %41 = vector.shape_cast %40 : vector<64xf32> to vector<1x64xf32>
    %42 = vector.broadcast %41 : vector<1x64xf32> to vector<8x64xf32>
    %43 = arith.subf %39, %42 : vector<8x64xf32>
    %44 = math.exp %43 : vector<8x64xf32>
    %cst_18 = arith.constant dense<0.000000e+00> : vector<64xf32>
    %45 = vector.multi_reduction <add>, %44, %cst_18 [0] : vector<8x64xf32> to vector<64xf32>
    %46 = vector.shape_cast %45 : vector<64xf32> to vector<1x64xf32>
    %47 = math.log %46 : vector<1x64xf32>
    %48 = arith.addf %47, %41 : vector<1x64xf32>
    %49 = vector.broadcast %48 : vector<1x64xf32> to vector<8x64xf32>
    %50 = arith.subf %39, %49 : vector<8x64xf32>
    %c0_19 = arith.constant 0 : index
    %c0_20 = arith.constant 0 : index
    %51 = vector.load %arg5[%c0_19, %c0_20] : memref<8x128xf32, #tpu.memory_space<vmem>>, vector<8x64xf32>
    tpu.vector_store %arg5[%c0_19, %c0_20], %50 {strides = array<i32>} : memref<8x128xf32, #tpu.memory_space<vmem>>, vector<8x64xf32>,
    %c0_21 = arith.constant 0 : index
    %c64 = arith.constant 64 : index
    %52 = vector.load %arg5[%c0_21, %c64] : memref<8x128xf32, #tpu.memory_space<vmem>>, vector<8x32xf32>
    tpu.vector_store %arg5[%c0_21, %c64], %35 {strides = array<i32>} : memref<8x128xf32, #tpu.memory_space<vmem>>, vector<8x32xf32>,
    %c0_22 = arith.constant 0 : index
    %c96 = arith.constant 96 : index
    %53 = vector.load %arg5[%c0_22, %c96] : memref<8x128xf32, #tpu.memory_space<vmem>>, vector<8x32xf32>
    tpu.vector_store %arg5[%c0_22, %c96], %33 {strides = array<i32>} : memref<8x128xf32, #tpu.memory_space<vmem>>, vector<8x32xf32>,
    return
  }
}

</mosaic_0001>

<bundles_post_ra>
// kernel: lstm_forward.1
= control target key start
LH: loop header
LB: loop body
LE: loop exit
PB: predicated region body
PF: predicated region fallthrough
CT: control target
= control target key end

     0   :  { %v549_v0 = vmov 0   ;;  %v550_v2 = vmov 0.0|0.0   ;;  %vm551_vm0 = vmmov 0   ;;  %v552_v8 = vmov 0.0   ;;  %s553_s24 = smov 64   ;;  %s554_s7 = smov 96   ;;  %s685_s0 = inlined_call_operand.vmem [shape: s32[8,1], index: 0, kind: input, shape index: {}]   ;;  %s686_s1 = inlined_call_operand.vmem [shape: f32[64,16], index: 1, kind: input, shape index: {}]   ;;  %s687_s3 = inlined_call_operand.vmem [shape: f32[48,128], index: 3, kind: input, shape index: {}]   ;;  %s688_s2 = inlined_call_operand.vmem [shape: f32[4,128], index: 2, kind: input, shape index: {}]   ;;  %s689_s4 = inlined_call_operand.vmem [shape: f32[32,64], index: 4, kind: input, shape index: {}]   ;;  %s690_s5 = inlined_call_operand.vmem [shape: f32[8,128], index: 5, kind: output, shape index: {}]  }
   0x1   :  { %536 = vset.pattern.permute.xlu0 %v549_v0  ;;  %v20_v1 = vld [vmem:[%s685_s0] sm:$0xff]  ;;  %503 = vmatprep.subr.bf16.mxu0 %v550_v2  ;;  %v30_v4 = vld [vmem:[%s686_s1 + $0x8] sm:$0xff]  ;;  %v31_v6 = vld [vmem:[%s686_s1 + $0x10] sm:$0xff]  ;;  %vm121_vm1 = vcmask 261120   ;;  %v21_v26 = vlaneseq  ;;  %vm37_vm2 = vcmask 523264   ;;  %vm199_vm4 = vcmask 130048  }
   0x2   :  { %v29_v3 = vld [vmem:[%s686_s1] sm:$0xff]  ;;  %24 = vperm.xlu0 %536, %v20_v1   ;;  %v32_v7 = vld [vmem:[%s686_s1 + $0x18] sm:$0xff]  ;;  %515 = vmatprep.subr.bf16.mxu1 %v550_v2  ;;  %v34_v11 = vld [vmem:[%s686_s1 + $0x28] sm:$0xff]  ;;  %vm412_vm5 = vcmask 785920   ;;  %vm418_vm6 = vcmask 1048320  }
   0x3   :  { %v504_v5 = vpack.c.bf16 %v30_v4, %v29_v3  ;;  %471 = vmatprep.mubr.msk.f32.mxu0 %vm551_vm0, %v552_v8  ;;  %482 = vmatprep.mubr.msk.f32.mxu1 %vm551_vm0, %v552_v8  ;;  %v507_v9 = vpack.c.bf16 %v32_v7, %v31_v6  ;;  %v33_v10 = vld [vmem:[%s686_s1 + $0x20] sm:$0xff]  ;;  %v117_v12 = vld [vmem:[%s687_s3 + $0x10] sm:$0xff]  ;;  %v118_v13 = vld [vmem:[%s687_s3 + $0x18] sm:$0xff]  ;;  %v22_v27 = vand.u32 127, %v21_v26  ;;  %v196_v34 = vshrl.u32 %v21_v26, 7 }
   0x4   :  { %v119_v14 = vld [vmem:[%s687_s3 + $0x20] sm:$0xff]  ;;  %v516_v15 = vpack.c.bf16 %v118_v13, %v117_v12  ;;  %v120_v16 = vld [vmem:[%s687_s3 + $0x28] sm:$0xff]  ;;  %v510_v17 = vpack.c.bf16 %v34_v11, %v33_v10  ;;  %v35_v18 = vld [vmem:[%s686_s1 + $0x30] sm:$0xff] }
   0x5   :  { %505 = vmatpush3.bf16.msra.mxu0 %v504_v5  ;;  %v519_v19 = vpack.c.bf16 %v120_v16, %v119_v14  ;;  %v36_v20 = vld [vmem:[%s686_s1 + $0x38] sm:$0xff]  ;;  %v115_v21 = vld [vmem:[%s687_s3] sm:$0xff]  ;;  %v116_v22 = vld [vmem:[%s687_s3 + $0x8] sm:$0xff]  ;;  %v197_v35 = vsub.s32 0, %v196_v34 }
   0x6   :  { %506 = vmatprep.subr.bf16.mxu0 %v550_v2  ;;  %517 = vmatpush3.bf16.msra.mxu1 %v516_v15  ;;  %v513_v23 = vpack.c.bf16 %v36_v20, %v35_v18  ;;  %v111_v24 = vld [vmem:[%s688_s2] sm:$0x1]  ;;  %v522_v25 = vpack.c.bf16 %v116_v22, %v115_v21  ;;  %v428_v37 = vld [vmem:[%s688_s2 + $0x2] ss:$0 sm:$0xff]  ;;  %v307_v47 = vld [vmem:[%s689_s4 + $0x8] sm:$0xff] }
   0x7   :  { %518 = vmatprep.subr.bf16.mxu1 %v550_v2  ;;  %v306_v46 = vld [vmem:[%s689_s4] sm:$0xff]  ;;  %v308_v49 = vld [vmem:[%s689_s4 + $0x10] sm:$0xff]  ;;  %v309_v50 = vld [vmem:[%s689_s4 + $0x18] sm:$0xff] }
   0x8   :  { %v525_v48 = vpack.c.bf16 %v307_v47, %v306_v46  ;;  %v528_v53 = vpack.c.bf16 %v309_v50, %v308_v49  ;;  %v430_v55 = vld [vmem:[%s688_s2 + $0x1] ss:$0 sm:$0xff]  ;;  %v431_v62 = vld [vmem:[%s688_s2 + $0x3] ss:$0 sm:$0xff] }
   0x9   :  { %508 = vmatpush3.bf16.msra.mxu0 %v507_v9 }
   0xa   :  { %509 = vmatprep.subr.bf16.mxu0 %v550_v2  ;;  %520 = vmatpush3.bf16.msra.mxu1 %v519_v19 }
   0xb   :  { %521 = vmatprep.subr.bf16.mxu1 %v550_v2 }
   0xd   :  { %511 = vmatpush3.bf16.msra.mxu0 %v510_v17  ;;  %483 = vmatmul.mubr.msk.f32.vlgmr.msra.gmra.mrb[0].mxu1 %vm121_vm1, %v111_v24 }
   0xe   :  { %512 = vmatprep.subr.bf16.mxu0 %v550_v2  ;;  %523 = vmatpush3.bf16.msra.mxu1 %v522_v25 }
   0xf   :  { %489 = vmatprep.mubr.msk.f32.mxu1 %vm551_vm0, %v552_v8  ;;  %524 = vmatprep.subr.bf16.mxu1 %v550_v2 }
  0x11   :  { %514 = vmatpush3.bf16.msra.mxu0 %v513_v23 }
  0x81   :  { %v25_v28 = vpop.permute.xlu0 %24 }
  0x82   :  { %vm26_vm3 = vcmp.eq.s32.totalorder %v22_v27, %v25_v28 }
  0x83   :  { %v424_v29 = vsel %vm26_vm3, 1.0, %v552_v8 }
  0x84   :  { %472 = vmatmul.mubr.msk.f32.vlgmr.msra.gmra.mrb[0].mxu0 %vm37_vm2, %v424_v29 }
  0xe0   :  { %v191_v30 = vpop.f32.mrb[0].mxu1 }
  0xe1   :  { %v484_v31 = vpop.f32.mrb[1].mxu1  ;;  %v198_v36 = vrot.slane %v191_v30, %v197_v35 }
 0x157   :  { %v107_v32 = vpop.f32.mrb[0].mxu0 }
 0x158   :  { %v473_v33 = vpop.f32.mrb[1].mxu0  ;;  %490 = vmatmul.mubr.msk.f32.vlgmr.msra.gmra.mrb[2].mxu1 %vm199_vm4, %v107_v32 }
 0x159   :  { %500 = vmatprep.mubr.msk.f32.mxu1 %vm551_vm0, %v552_v8  ;;  %526 = vmatpush3.bf16.msra.mxu1 %v525_v48 }
 0x15a   :  { %527 = vmatprep.subr.bf16.mxu1 %v550_v2 }
 0x15d   :  { %529 = vmatpush3.bf16.msra.mxu1 %v528_v53 }
 0x22b   :  { %v269_v38 = vpop.f32.mrb[2].mxu1 }
 0x22c   :  { %v270_v39 = vadd.f32 %v269_v38, %v198_v36  ;;  %v491_v40 = vpop.f32.mrb[3].mxu1 }
 0x22e   :  { %v277_v41 = vadd.f32 %v428_v37, %v270_v39 }
 0x230   :  { %537 = vtanh.f32 %v277_v41  ;;  %v429_v43 = vmul.f32 -1.442695, %v277_v41 }
 0x232   :  { %539 = vpow2.f32 %v429_v43 }
 0x23a   :  { %v538_v42 = vpop.eup %537 }
 0x23b   :  { %291 = vrot.lane.b32.xlu0 %v538_v42, %s553_s24 }
 0x23c   :  { %v540_v44 = vpop.eup %539 }
 0x23d   :  { %v281_v45 = vadd.f32 1.0, %v540_v44 }
 0x23f   :  { %541 = vrcp.f32 %v281_v45 }
 0x249   :  { %v542_v51 = vpop.eup %541 }
 0x24a   :  { %v289_v56 = vmul.f32 %v542_v51, %v430_v55 }
 0x2ad   :  { %v292_v52 = vpop.permute.xlu0 %291 }
 0x2ae   :  { %v294_v54 = vmul.f32 %v542_v51, %v292_v52 }
 0x2b0   :  { %296 = vrot.lane.b32.xlu1 %v294_v54, %s554_s7 }
 0x2b4   :  { %302 = vrot.lane.b32.xlu1 %v542_v51, %s553_s24 }
 0x322   :  { %v297_v57 = vpop.permute.xlu1 %296 }
 0x323   :  { %v299_v58 = vadd.f32 %v297_v57, %v289_v56 }
 0x325   :  { %543 = vtanh.f32 %v299_v58  ;;  %415 = vrot.lane.b32.xlu1 %v299_v58, %s554_s7 }
 0x326   :  { %v303_v60 = vpop.permute.xlu1 %302 }
 0x32f   :  { %v544_v59 = vpop.eup %543 }
 0x330   :  { %v305_v61 = vmul.f32 %v544_v59, %v303_v60 }
 0x332   :  { %409 = vrot.lane.b32.xlu0 %v305_v61, %s553_s24  ;;  %501 = vmatmul.mubr.msk.f32.vlgmr.msra.gmra.mrb[4].mxu1 %vm121_vm1, %v305_v61 }
 0x397   :  { %v416_v24 = vpop.permute.xlu1 %415 }
 0x3a4   :  { %v410_v23 = vpop.permute.xlu0 %409 }
 0x405   :  { %v383_v63 = vpop.f32.mrb[4].mxu1 }
 0x406   :  { %v384_v0 = vadd.f32 %v431_v62, %v383_v63  ;;  %v502_v1 = vpop.f32.mrb[5].mxu1 }
 0x408   :  { %v387_v2 = vsel %vm37_vm2, %v384_v0, -inf }
 0x409   :  { %v388_v3 = vrot.slane %v387_v2, 4 }
 0x40b   :  { %v389_v4 = vmax.f32 %v387_v2, %v388_v3 }
 0x40d   :  { %v390_v5 = vrot.slane %v389_v4, 2 }
 0x40f   :  { %v391_v6 = vmax.f32 %v389_v4, %v390_v5 }
 0x411   :  { %v392_v7 = vrot.slane %v391_v6, 1 }
 0x413   :  { %v393_v8 = vmax.f32 %v391_v6, %v392_v7 }
 0x415   :  { %v394_v9 = vsub.f32 %v384_v0, %v393_v8 }
 0x417   :  { %v395_v10 = vmul.f32 1.442695, %v394_v9 }
 0x419   :  { %545 = vpow2.f32 %v395_v10 }
 0x423   :  { %v546_v11 = vpop.eup %545 }
 0x424   :  { %v397_v12 = vsel %vm37_vm2, %v546_v11, 0.0 }
 0x425   :  { %v398_v13 = vrot.slane %v397_v12, 4 }
 0x427   :  { %v399_v14 = vadd.f32 %v398_v13, %v397_v12 }
 0x429   :  { %v400_v15 = vrot.slane %v399_v14, 2 }
 0x42b   :  { %v401_v16 = vadd.f32 %v400_v15, %v399_v14 }
 0x42d   :  { %v402_v17 = vrot.slane %v401_v16, 1 }
 0x42f   :  { %v403_v18 = vadd.f32 %v402_v17, %v401_v16 }
 0x431   :  { %547 = vlog2.f32 %v403_v18 }
 0x43b   :  { %v548_v19 = vpop.eup %547 }
 0x43c   :  { %v405_v20 = vmul.f32 0.6931472, %v548_v19 }
 0x43e   :  { %v406_v21 = vadd.f32 %v405_v20, %v393_v8 }
 0x440   :  { %v407_v22 = vsub.f32 %v384_v0, %v406_v21 }
 0x442   :  { %408 = vst.msk [vmem:[%s690_s5] sm:$0xff] %vm37_vm2, %v407_v22 }
 0x443   :  { %413 = vst.msk [vmem:[%s690_s5] sm:$0xff] %vm412_vm5, %v410_v23 }
 0x444   :  { %419 = vst.msk [vmem:[%s690_s5] sm:$0xff] %vm418_vm6, %v416_v24 }

</bundles_post_ra>
